<compile_context>
chip_gen: v5e
topology: v5e:2x2
jax: 0.10.0
libtpu: 0.0.40
codegen_flags: <defaults>
</compile_context>

<pallas_src>
import jax
import jax.numpy as jnp
from jax.experimental import pallas as pl
from jax.experimental.pallas import tpu as pltpu

INPUT_DIM = 512
HIDDEN1 = 256
HIDDEN2 = 128
NUM_CLASSES = 5
OUT_PAD = 128  # lane-dense padded width of the final layer


def _round_up(n, m):
    return ((n + m - 1) // m) * m


def mlp_kernel(x_ref, w1_ref, b1_ref, w2_ref, b2_ref, w3_ref, b3_ref, o_ref):
    # Layer 1: Linear(512 -> 256) + ReLU   (Dropout = identity in eval mode)
    h1 = jnp.dot(x_ref[...], w1_ref[...], preferred_element_type=jnp.float32)
    h1 = jnp.maximum(h1 + b1_ref[...], 0.0)

    # Layer 2: Linear(256 -> 128) + ReLU   (Dropout = identity in eval mode)
    h2 = jnp.dot(h1.astype(w2_ref.dtype), w2_ref[...],
                 preferred_element_type=jnp.float32)
    h2 = jnp.maximum(h2 + b2_ref[...], 0.0)

    # Layer 3: Linear(128 -> 128 padded); only the first NUM_CLASSES lanes are
    # meaningful, the rest are zero-weight columns (lane-dense store).
    logits = jnp.dot(h2.astype(w3_ref.dtype), w3_ref[...],
                     preferred_element_type=jnp.float32)
    o_ref[...] = (logits + b3_ref[...]).astype(o_ref.dtype)


def prepare_params(params, compute_dtype=jnp.bfloat16):
    """One-time weight prep (hoist off the per-call hot path).

    Transposes torch-convention (out, in) weights to (in, out), casts to the
    MXU compute dtype, and zero-pads layer 3 / its bias to a lane-dense
    128-wide output. Biases stay f32 (added after the f32 accumulation).
    """
    w3 = jnp.zeros((HIDDEN2, OUT_PAD), compute_dtype)
    w3 = w3.at[:, :NUM_CLASSES].set(params["w3"].T.astype(compute_dtype))
    b3 = jnp.zeros((1, OUT_PAD), jnp.float32)
    b3 = b3.at[:, :NUM_CLASSES].set(params["b3"].astype(jnp.float32))
    return {
        "w1": params["w1"].T.astype(compute_dtype),                 # (512, 256)
        "b1": params["b1"].reshape(1, HIDDEN1).astype(jnp.float32),
        "w2": params["w2"].T.astype(compute_dtype),                 # (256, 128)
        "b2": params["b2"].reshape(1, HIDDEN2).astype(jnp.float32),
        "w3": w3,                                                   # (128, 128)
        "b3": b3,                                                   # (1, 128)
    }


def clip_b32_classifier(x, prepared, *, tile_m=1024, out_dtype=None):
    """x: (B, INPUT_DIM) float.  prepared: output of prepare_params().

    out_dtype: logits dtype written by the kernel (defaults to the compute
    dtype, i.e. bf16 by default -> halves the output writeback bytes).
    Returns (B, NUM_CLASSES) logits in out_dtype.
    """
    B, D = x.shape
    assert D == INPUT_DIM
    compute_dtype = prepared["w1"].dtype
    out_dtype = out_dtype if out_dtype is not None else compute_dtype

    # --- Tile selection: as big as possible (amortize ~0.35us per grid step),
    # --- but capped at ~half the (8-rounded) batch so batches that fit in one
    # --- or two tiles still produce >= 2 grid steps (keeps both v7x TCs busy;
    # --- negligible cost on single-TC v5e/v6e). Tile stays a multiple of 8.
    half = _round_up(pl.cdiv(_round_up(B, 8), 2), 8)
    tile = max(8, min(_round_up(tile_m, 8), half))
    grid_m = pl.cdiv(B, tile)

    # No full-batch jnp.pad: Pallas clips the boundary-block DMA to valid rows
    # and masks the boundary-block stores; garbage only ever lands in rows
    # that do not exist in the (B, OUT_PAD) output.
    x_c = x.astype(compute_dtype)

    flops = 2 * B * (INPUT_DIM * HIDDEN1 + HIDDEN1 * HIDDEN2 + HIDDEN2 * OUT_PAD)
    bytes_accessed = (
        x_c.size * x_c.dtype.itemsize
        + sum(v.size * v.dtype.itemsize for v in prepared.values())
        + B * OUT_PAD * jnp.dtype(out_dtype).itemsize)

    out = pl.pallas_call(
        mlp_kernel,
        out_shape=jax.ShapeDtypeStruct((B, OUT_PAD), out_dtype),
        grid_spec=pltpu.PrefetchScalarGridSpec(
            num_scalar_prefetch=0,
            grid=(grid_m,),
            in_specs=[
                # x tile streams along the batch axis. If an xprof trace shows
                # exposed input DMA (bf16 path can be x-DMA-bound), add
                # pipeline_mode=pl.Buffered(3) on this spec only.
                pl.BlockSpec((tile, INPUT_DIM), lambda i: (i, 0)),
                # Weights / biases: constant index_map -> resident in VMEM.
                pl.BlockSpec((INPUT_DIM, HIDDEN1), lambda i: (0, 0)),   # w1
                pl.BlockSpec((1, HIDDEN1), lambda i: (0, 0)),           # b1
                pl.BlockSpec((HIDDEN1, HIDDEN2), lambda i: (0, 0)),     # w2
                pl.BlockSpec((1, HIDDEN2), lambda i: (0, 0)),           # b2
                pl.BlockSpec((HIDDEN2, OUT_PAD), lambda i: (0, 0)),     # w3 (padded)
                pl.BlockSpec((1, OUT_PAD), lambda i: (0, 0)),           # b3 (padded)
            ],
            out_specs=pl.BlockSpec((tile, OUT_PAD), lambda i: (i, 0)),
        ),
        compiler_params=pltpu.CompilerParams(
            dimension_semantics=("parallel",),
        ),
        cost_estimate=pl.CostEstimate(
            flops=flops, transcendentals=0, bytes_accessed=bytes_accessed),
    )(x_c, prepared["w1"], prepared["b1"], prepared["w2"], prepared["b2"],
      prepared["w3"], prepared["b3"])

    # Drop the zero-padded output lanes.
    return out[:, :NUM_CLASSES]


def init_params(key):
    """Deterministic synthetic parameters, torch nn.Linear conventions (out, in)."""
    ks = jax.random.split(key, 6)

    def uinit(k, shape, fan_in):
        bound = 1.0 / jnp.sqrt(fan_in)
        return jax.random.uniform(k, shape, jnp.float32, -bound, bound)

    return {
        "w1": uinit(ks[0], (HIDDEN1, INPUT_DIM), INPUT_DIM),
        "b1": uinit(ks[1], (HIDDEN1,), INPUT_DIM),
        "w2": uinit(ks[2], (HIDDEN2, HIDDEN1), HIDDEN1),
        "b2": uinit(ks[3], (HIDDEN2,), HIDDEN1),
        "w3": uinit(ks[4], (NUM_CLASSES, HIDDEN2), HIDDEN2),
        "b3": uinit(ks[5], (NUM_CLASSES,), HIDDEN2),
    }


def reference_forward(x, params):
    h1 = jnp.maximum(x @ params["w1"].T + params["b1"], 0.0)
    h2 = jnp.maximum(h1 @ params["w2"].T + params["b2"], 0.0)
    return h2 @ params["w3"].T + params["b3"]


if __name__ == "__main__":
    key = jax.random.PRNGKey(0)
    k_x, k_p = jax.random.split(key)
    params = init_params(k_p)

    # Ragged small batch (not a multiple of 8) to exercise boundary-block
    # handling (no input padding anymore).
    batch = 20
    x = jax.random.normal(k_x, (batch, INPUT_DIM), jnp.float32)
    ref = reference_forward(x, params)

    # Default path: bf16 compute + bf16 logits writeback, f32 accumulation.
    prep_bf16 = prepare_params(params)  # bf16 default on all generations
    out_bf16 = jax.block_until_ready(clip_b32_classifier(x, prep_bf16))
    assert out_bf16.shape == (batch, NUM_CLASSES)
    assert jnp.allclose(out_bf16.astype(jnp.float32), ref, atol=5e-2, rtol=5e-2)

    # f32 path (exact-ish): tight tolerance.
    prep_f32 = prepare_params(params, compute_dtype=jnp.float32)
    out_f32 = jax.block_until_ready(
        clip_b32_classifier(x, prep_f32, out_dtype=jnp.float32))
    assert out_f32.shape == (batch, NUM_CLASSES)
    assert jnp.allclose(out_f32, ref, atol=1e-4, rtol=1e-4)

    # Slightly larger ragged batch: exercises multiple grid steps with a
    # partially-out-of-bounds boundary block.
    batch2 = 200
    x2 = jax.random.normal(k_x, (batch2, INPUT_DIM), jnp.float32)
    ref2 = reference_forward(x2, params)
    out2 = jax.block_until_ready(clip_b32_classifier(x2, prep_bf16))
    assert out2.shape == (batch2, NUM_CLASSES)
    assert jnp.allclose(out2.astype(jnp.float32), ref2, atol=5e-2, rtol=5e-2)

    print("KERNEL_OK")
</pallas_src>

<mosaic_0001>
module attributes {stable_mosaic.version = 11 : i64} {
  func.func @mlp_kernel(%arg0: i32, %arg1: memref<16x512xbf16, #tpu.memory_space<vmem>>, %arg2: memref<512x256xbf16, #tpu.memory_space<vmem>>, %arg3: memref<1x256xf32, #tpu.memory_space<vmem>>, %arg4: memref<256x128xbf16, #tpu.memory_space<vmem>>, %arg5: memref<1x128xf32, #tpu.memory_space<vmem>>, %arg6: memref<128x128xbf16, #tpu.memory_space<vmem>>, %arg7: memref<1x128xf32, #tpu.memory_space<vmem>>, %arg8: memref<16x128xbf16, #tpu.memory_space<vmem>>) attributes {dimension_semantics = [#tpu.dimension_semantics<parallel>], iteration_bounds = array<i64: 2>, scalar_prefetch = 0 : i64, scratch_operands = 0 : i64, tpu.core_type = #tpu.core_type<tc>, window_params = [{transform_indices = @transform_0, window_bounds = array<i64: 16, 512>}, {pipeline_mode = #tpu.pipeline_mode<synchronous>, transform_indices = @transform_1, window_bounds = array<i64: 512, 256>}, {pipeline_mode = #tpu.pipeline_mode<synchronous>, transform_indices = @transform_2, window_bounds = array<i64: 1, 256>}, {pipeline_mode = #tpu.pipeline_mode<synchronous>, transform_indices = @transform_3, window_bounds = array<i64: 256, 128>}, {pipeline_mode = #tpu.pipeline_mode<synchronous>, transform_indices = @transform_4, window_bounds = array<i64: 1, 128>}, {pipeline_mode = #tpu.pipeline_mode<synchronous>, transform_indices = @transform_5, window_bounds = array<i64: 128, 128>}, {pipeline_mode = #tpu.pipeline_mode<synchronous>, transform_indices = @transform_6, window_bounds = array<i64: 1, 128>}, {transform_indices = @transform_7, window_bounds = array<i64: 16, 128>}]} {
    %c0 = arith.constant 0 : index
    %c0_0 = arith.constant 0 : index
    %0 = vector.load %arg1[%c0, %c0_0] : memref<16x512xbf16, #tpu.memory_space<vmem>>, vector<16x512xbf16>
    %c0_1 = arith.constant 0 : index
    %c0_2 = arith.constant 0 : index
    %1 = vector.load %arg2[%c0_1, %c0_2] : memref<512x256xbf16, #tpu.memory_space<vmem>>, vector<512x256xbf16>
    %cst = arith.constant dense<0.000000e+00> : vector<16x256xf32>
    %2 = tpu.matmul %0, %1, %cst {dimension_numbers = #tpu.dot_dimension_numbers<[1], [0], [0], [1], [0, 0, 1, 1], [], []>} : vector<16x512xbf16>, vector<512x256xbf16>, vector<16x256xf32> -> vector<16x256xf32>
    %c0_3 = arith.constant 0 : index
    %c0_4 = arith.constant 0 : index
    %3 = vector.load %arg3[%c0_3, %c0_4] : memref<1x256xf32, #tpu.memory_space<vmem>>, vector<1x256xf32>
    %4 = vector.broadcast %3 : vector<1x256xf32> to vector<16x256xf32>
    %5 = arith.addf %2, %4 : vector<16x256xf32>
    %cst_5 = arith.constant 0.000000e+00 : f32
    %6 = vector.broadcast %cst_5 : f32 to vector<16x256xf32>
    %7 = arith.maximumf %5, %6 : vector<16x256xf32>
    %8 = arith.truncf %7 : vector<16x256xf32> to vector<16x256xbf16>
    %c0_6 = arith.constant 0 : index
    %c0_7 = arith.constant 0 : index
    %9 = vector.load %arg4[%c0_6, %c0_7] : memref<256x128xbf16, #tpu.memory_space<vmem>>, vector<256x128xbf16>
    %cst_8 = arith.constant dense<0.000000e+00> : vector<16x128xf32>
    %10 = tpu.matmul %8, %9, %cst_8 {dimension_numbers = #tpu.dot_dimension_numbers<[1], [0], [0], [1], [0, 0, 1, 1], [], []>} : vector<16x256xbf16>, vector<256x128xbf16>, vector<16x128xf32> -> vector<16x128xf32>
    %c0_9 = arith.constant 0 : index
    %c0_10 = arith.constant 0 : index
    %11 = vector.load %arg5[%c0_9, %c0_10] : memref<1x128xf32, #tpu.memory_space<vmem>>, vector<1x128xf32>
    %12 = vector.broadcast %11 : vector<1x128xf32> to vector<16x128xf32>
    %13 = arith.addf %10, %12 : vector<16x128xf32>
    %cst_11 = arith.constant 0.000000e+00 : f32
    %14 = vector.broadcast %cst_11 : f32 to vector<16x128xf32>
    %15 = arith.maximumf %13, %14 : vector<16x128xf32>
    %16 = arith.truncf %15 : vector<16x128xf32> to vector<16x128xbf16>
    %c0_12 = arith.constant 0 : index
    %c0_13 = arith.constant 0 : index
    %17 = vector.load %arg6[%c0_12, %c0_13] : memref<128x128xbf16, #tpu.memory_space<vmem>>, vector<128x128xbf16>
    %cst_14 = arith.constant dense<0.000000e+00> : vector<16x128xf32>
    %18 = tpu.matmul %16, %17, %cst_14 {dimension_numbers = #tpu.dot_dimension_numbers<[1], [0], [0], [1], [0, 0, 1, 1], [], []>} : vector<16x128xbf16>, vector<128x128xbf16>, vector<16x128xf32> -> vector<16x128xf32>
    %c0_15 = arith.constant 0 : index
    %c0_16 = arith.constant 0 : index
    %19 = vector.load %arg7[%c0_15, %c0_16] : memref<1x128xf32, #tpu.memory_space<vmem>>, vector<1x128xf32>
    %20 = vector.broadcast %19 : vector<1x128xf32> to vector<16x128xf32>
    %21 = arith.addf %18, %20 : vector<16x128xf32>
    %22 = arith.truncf %21 : vector<16x128xf32> to vector<16x128xbf16>
    %c0_17 = arith.constant 0 : index
    %c0_18 = arith.constant 0 : index
    %23 = vector.load %arg8[%c0_17, %c0_18] : memref<16x128xbf16, #tpu.memory_space<vmem>>, vector<16x128xbf16>
    tpu.vector_store %arg8[%c0_17, %c0_18], %22 {strides = array<i32>} : memref<16x128xbf16, #tpu.memory_space<vmem>>, vector<16x128xbf16>,
    return
  }
  func.func @transform_0(%arg0: i32) -> (i32, i32) {
    %c0_i32 = arith.constant 0 : i32
    %c0_i32_0 = arith.constant 0 : i32
    return %arg0, %c0_i32 : i32, i32
  }
  func.func @transform_1(%arg0: i32) -> (i32, i32) {
    %c0_i32 = arith.constant 0 : i32
    %c0_i32_0 = arith.constant 0 : i32
    %c0_i32_1 = arith.constant 0 : i32
    return %c0_i32, %c0_i32_0 : i32, i32
  }
  func.func @transform_2(%arg0: i32) -> (i32, i32) {
    %c0_i32 = arith.constant 0 : i32
    %c0_i32_0 = arith.constant 0 : i32
    %c0_i32_1 = arith.constant 0 : i32
    return %c0_i32, %c0_i32_0 : i32, i32
  }
  func.func @transform_3(%arg0: i32) -> (i32, i32) {
    %c0_i32 = arith.constant 0 : i32
    %c0_i32_0 = arith.constant 0 : i32
    %c0_i32_1 = arith.constant 0 : i32
    return %c0_i32, %c0_i32_0 : i32, i32
  }
  func.func @transform_4(%arg0: i32) -> (i32, i32) {
    %c0_i32 = arith.constant 0 : i32
    %c0_i32_0 = arith.constant 0 : i32
    %c0_i32_1 = arith.constant 0 : i32
    return %c0_i32, %c0_i32_0 : i32, i32
  }
  func.func @transform_5(%arg0: i32) -> (i32, i32) {
    %c0_i32 = arith.constant 0 : i32
    %c0_i32_0 = arith.constant 0 : i32
    %c0_i32_1 = arith.constant 0 : i32
    return %c0_i32, %c0_i32_0 : i32, i32
  }
  func.func @transform_6(%arg0: i32) -> (i32, i32) {
    %c0_i32 = arith.constant 0 : i32
    %c0_i32_0 = arith.constant 0 : i32
    %c0_i32_1 = arith.constant 0 : i32
    return %c0_i32, %c0_i32_0 : i32, i32
  }
  func.func @transform_7(%arg0: i32) -> (i32, i32) {
    %c0_i32 = arith.constant 0 : i32
    %c0_i32_0 = arith.constant 0 : i32
    return %arg0, %c0_i32 : i32, i32
  }
}

</mosaic_0001>

<bundles_post_ra>
// kernel: tpu_custom_call.1
= control target key start
LH: loop header
LB: loop body
LE: loop exit
PB: predicated region body
PF: predicated region fallthrough
CT: control target
= control target key end

     0   :  { %s2445_s0 = inlined_call_operand.hbm [shape: bf16[20,512], index: 0, kind: input, shape index: {}]   ;;  %s2446_s1 = inlined_call_operand.hbm [shape: bf16[512,256], index: 1, kind: input, shape index: {}]   ;;  %s2447_s2 = inlined_call_operand.hbm [shape: f32[1,256], index: 2, kind: input, shape index: {}]   ;;  %s2448_s3 = inlined_call_operand.hbm [shape: bf16[256,128], index: 3, kind: input, shape index: {}]   ;;  %s2449_s4 = inlined_call_operand.vmem [shape: f32[1,128], index: 4, kind: input, shape index: {}]   ;;  %s2450_s5 = inlined_call_operand.hbm [shape: bf16[128,128], index: 5, kind: input, shape index: {}]   ;;  %s2451_s6 = inlined_call_operand.vmem [shape: f32[1,128], index: 6, kind: input, shape index: {}]   ;;  %s2452_s7 = inlined_call_operand.hbm [shape: bf16[20,128], index: 7, kind: output, shape index: {}]  }
   0x1   :  { %2460 = sst [smem:[#allocation20_spill]] %s2446_s1 }
   0x2   :  { %2461 = sst [smem:[#allocation21_spill]] %s2448_s3 }
   0x3   :  { %2462 = sst [smem:[#allocation22_spill]] %s2452_s7 }
   0x4   :  { %12 = vsyncpa [#allocation3], 0 }
   0x5   :  { %14 = vsyncpa [#allocation3 + $0x1], 0 }
   0x6   :  { %15 = vsyncpa [#allocation6], 0 }
   0x7   :  { %16 = vsyncpa [#allocation9], 0 }
   0x8   :  { %17 = vsyncpa [#allocation4], 0 }
   0x9   :  { %19 = vsyncpa [#allocation4 + $0x1], 0  ;;  %s2189_s24 = smov 0   ;;  %s2191_s25 = smov 0  }
   0xa   :  { %s2193_s26 = smov 0   ;;  %s2195_s27 = smov 0  }
   0xb LB: > { %2463 = sst [smem:[#allocation16_spill]] %s2121_s24  ;;  %s2210_s28 = sadd.s32 4294967295, %s2133_s27   ;;  %s2133_s27 = sphi %s2195_s27, %s2486_s27   ;;  %s2129_s26 = sphi %s2193_s26, %s2490_s26   ;;  %s2125_s25 = sphi %s2191_s25, %s2489_s25   ;;  %s2121_s24 = sphi %s2189_s24, %s2488_s24  }
   0xc   : > { %s1298_s29 = sadd.s32 4294967294, %s2133_s27   ;;  %s2214_s30 = sadd.s32 1, %s2133_s27  }
   0xd   : > { %2464 = sst [smem:[#allocation17_spill]] %s2214_s30  ;;  %s32_s8 = sadd.s32 1, %s2129_s26 }
   0xe   : > { %s29_s9 = ssub.s32 %s2133_s27, %s2214_s30  ;;  %p39_p0 = scmp.ne.s32.totalorder %s2129_s26, %s2125_s25 }
   0xf   : > { %p30_p1 = scmp.eq.s32.totalorder %s29_s9, 0  ;;  %p40_p2 = scmp.eq.s32.totalorder %s2133_s27, 0 }
  0x10   : > { %p45_p3 = scmp.ne.s32.totalorder %s2125_s25, %s2121_s24  ;;  %p2459_p4 = scmp.eq.s32.totalorder %s2210_s28, 0 }
  0x11   : > { %s2226_s10 = scalar_select %p30_p1, %s2129_s26, %s32_s8  }
  0x12   : > { %p2228_p5 = por %p40_p2, %p39_p0  ;;  %p2234_p6 = por %p2459_p4, %p45_p3 }
  0x13   : > { %2465 = sst [smem:[#allocation18_spill]] %s2226_s10  ;;  %p195_p7 = scmp.eq.s32.totalorder %s2210_s28, 1 }
  0x14   : > { %p201_p8 = scmp.eq.s32.totalorder %s1298_s29, 1  ;;  %p1299_p9 = scmp.ge.s32.totalorder %s2133_s27, 1 }
  0x15   : > { %p208_p10 = scmp.lt.s32.totalorder %s2133_s27, 3  ;;  %p2241_p11 = por %p195_p7, %p39_p0 }
  0x16   : > { %p2245_p12 = por %p201_p8, %p45_p3  ;;  %s2472_s1 = sld [smem:[#allocation20_spill]] }
  0x17   : > { %p2249_p13 = pnand %p1299_p9, %p208_p10  ;;  %s2135_s19 = smov [#allocation5]  }
  0x18   : > { %s2469_s14 = scalar_select %p2245_p12, 1, 0 }
  0x19   : > { %p1817_p1 = pneg %p2249_p13  ;;  %s221_s20 = sshll.u32 %s2135_s19, 4  ;;  %s222_s20 = int_to_ptr.vmem [resolvable:$true] %s221_s20 }
  0x1a   : > { %2470 = sst [smem:[#allocation19_spill]] %s2469_s14  ;;  %s2136_s8 = smov 128  }
  0x1b   : > { %p2260_p0 = pnand %p1817_p1, %p2459_p4  ;;  %s2474_s3 = sld [smem:[#allocation21_spill]] }
  0x1c   : > { %s219_s18 = sshll.u32 %s2472_s1, 4  ;;  %s2137_s9 = smov 8   ;;  %s220_s18 = int_to_ptr.hbm [resolvable:$true] %s219_s18 }
  0x1d   : > { %1820 = dma.hbm_to_vmem [thread:$0]  (!%p2260_p0), %s220_s18, 8192, %s222_s20, [#allocation6], %s2136_s8, %s2136_s8, %s2137_s9  }
  0x1e   : > { %s2138_s16 = smov [#allocation8]   ;;  %s234_s10 = sshll.u32 %s2447_s2, 4  ;;  %s235_s10 = int_to_ptr.hbm [resolvable:$true] %s234_s10 }
  0x1f   : > { %s247_s17 = sshll.u32 %s2138_s16, 4  ;;  %s2139_s30 = smov 64   ;;  %s248_s17 = int_to_ptr.vmem [resolvable:$true] %s247_s17 }
  0x20   : > { %s2140_s14 = smov 4   ;;  %s2141_s22 = smov [#allocation7]  }
  0x21   : > { %s245_s29 = sshll.u32 %s2474_s3, 4  ;;  %s236_s23 = sshll.u32 %s2141_s22, 4  ;;  %s246_s29 = int_to_ptr.hbm [resolvable:$true] %s245_s29  ;;  %s237_s23 = int_to_ptr.vmem [resolvable:$true] %s236_s23 }
  0x22   : > { %1826 = dma.hbm_to_vmem [thread:$0]  (!%p2260_p0), %s246_s29, 2048, %s248_s17, [#allocation9], %s2139_s30, %s2139_s30, %s2140_s14  }
  0x23   : > { %s262_s7 = sshll.u32 %s2450_s5, 4  ;;  %s2142_s18 = smov [#allocation10]   ;;  %s263_s7 = int_to_ptr.hbm [resolvable:$true] %s262_s7 }
  0x24   : > { %1823 = dma.hbm_to_vmem [thread:$0]  (!%p2260_p0), %s235_s10, 32, %s237_s23, [#allocation6]  }
  0x25   : > { %s264_s20 = sshll.u32 %s2142_s18, 4  ;;  %p2458_p2 = scmp.ge.s32.totalorder %s2133_s27, 2  ;;  %s265_s20 = int_to_ptr.vmem [resolvable:$true] %s264_s20 }
  0x26   : > { %1829 = dma.hbm_to_vmem [thread:$0]  (!%p2260_p0), %s263_s7, 1024, %s265_s20, [#allocation9], %s2139_s30, %s2139_s30, %s2140_s14  }
  0x27   : > { %277 = sbr.rel (%p2458_p2) target bundleno = 80 (0x50), region = 40 }
  0x2c   : > { %280 = sbr.rel (!%p2228_p5) target bundleno = 80 (0x50), region = 44  ;;  %s281_s1 = sand.u32 (%p2228_p5), 1, %s2129_s26  }
  0x2d   : > { %s1306_s3 = sshll.u32 (%p2228_p5), %s2133_s27, 1  ;;  %s1305_s24 = sshll.u32 (%p2228_p5), %s281_s1, 5 }
  0x2e   : > { %s287_s10 = ssub.s32 (%p2228_p5), 3, %s1306_s3  ;;  %s2291_s14 = scalar_lea.sflag (%p2228_p5), [#allocation3], %s281_s1 }
  0x2f   : > { %p288_p3 = scmp.lt.s32.totalorder (%p2228_p5), %s287_s10, 2  ;;  %s285_s29 = scalar_lea.vmem (%p2228_p5), [#allocation2], %s1305_s24 }
  0x31   : > { %s2492_s10 = smov (!%p288_p3, %s287_s10), 2 }
  0x32   : > { %s1698_s21 = sshll.u32 %s2492_s10, 4 }
  0x33   : > { %s292_s7 = ssub.s32 32, %s1698_s21 }
  0x34   : > { %s293_s30 = sshll.u32 %s292_s7, 4 }
  0x35   : > { %294 = vsyncadd %s2291_s14, %s293_s30  ;;  %p2294_p5 = scmp.ne.s32.totalorder %s1698_s21, 0  ;;  %s1700_s8 = sshll.u32 %s2133_s27, 5 }
  0x36   : > { %s298_s17 = scalar_lea.hbm %s2445_s0, %s1700_s8  ;;  %s2302_s19 = sshll.u32 %s285_s29, 4  ;;  %s303_s19 = int_to_ptr.vmem [resolvable:$true] %s2302_s19 }
  0x37   : > { %s300_s22 = sshll.u32 %s298_s17, 4  ;;  %s1313_s23 = sshll.u32 %s2492_s10, 8  ;;  %s2305_s22 = int_to_ptr.hbm [resolvable:$true] %s300_s22 }
  0x38   : > { %s2009_s18 = sshra.s32 %s2305_s22, 4  ;;  %s2011_s20 = sshrl.u32 %s1313_s23, 4  ;;  %s2010_s18 = int_to_ptr.hbm [resolvable:$true] %s2009_s18 }
  0x39   : > { %s2016_s1 = scalar_lea.hbm %s2010_s18, %s2011_s20  ;;  %s2020_s21 = scalar_lea.hbm %s2445_s0, 48 }
  0x3a   : > { %p2017_p7 = scmp.ne.s32.totalorder %s2010_s18, %s2016_s1  ;;  %p2021_p10 = scmp.lt.s32.totalorder %s2010_s18, %s2445_s0 }
  0x3b   : > { %p2022_p1 = scmp.lt.s32.totalorder %s2020_s21, %s2016_s1 }
  0x3c   : > { %p2018_p8 = pnand %p2017_p7, %p2294_p5 }
  0x3d   : > { %p2023_p0 = por %p2022_p1, %p2021_p10 }
  0x3e   : > { %p2019_p9 = pneg %p2018_p8 }
  0x40   : > { %p2024_p3 = pnand %p2023_p0, %p2019_p9 }
  0x42   : > { %2027 = shalt.err (!%p2024_p3)
}
  0x43   : > { %s2028_s29 = sshra.s32 %s303_s19, 4  ;;  %s2143_s9 = smov [#allocation2]   ;;  %s2029_s29 = int_to_ptr.vmem [resolvable:$true] %s2028_s29 }
  0x44   : > { %s2035_s8 = scalar_lea.vmem %s2029_s29, %s2011_s20  ;;  %s2039_s16 = scalar_lea.vmem %s2143_s9, 64 }
  0x45   : > { %p2036_p7 = scmp.ne.s32.totalorder %s2029_s29, %s2035_s8  ;;  %p2041_p4 = scmp.lt.s32.totalorder %s2039_s16, %s2035_s8 }
  0x47   : > { %p2037_p8 = pnand %p2036_p7, %p2294_p5 }
  0x49   : > { %p2038_p2 = pneg %p2037_p8 }
  0x4b   : > { %p2043_p12 = pnand %p2041_p4, %p2038_p2 }
  0x4d   : > { %2046 = shalt.err (!%p2043_p12)
}
  0x4e   : > { %s2144_s17 = smov 256   ;;  %s2145_s18 = smov 16  }
  0x4f   : > { %308 = dma.hbm_to_vmem [thread:$0]  (%p2294_p5), %s2305_s22, %s1313_s23, %s303_s19, %s2291_s14, %s2144_s17, %s2144_s17, %s2145_s18  }
  0x50 PF: > { %314 = sbr.rel (%p2249_p13) target bundleno = 624 (0x270), region = 48  ;;  %s2334_s20 = sand.u32 (!%p2249_p13), 1, %s2125_s25  }
  0x51   : > { %s1315_s1 = sshll.u32 (!%p2249_p13), %s2334_s20, 5  ;;  %s317_s3 = scalar_lea.sflag (!%p2249_p13), [#allocation3], %s2334_s20 }
  0x52   : > { %s2338_s24 = scalar_lea.vmem (!%p2249_p13), [#allocation2], %s1315_s1 }
  0x55   : > { %2104 = dma.done.wait (%p2234_p6), %s317_s3, 512  }
  0x56   : > { %2106 = vsyncadd (%p2234_p6), %s317_s3, 4294966784  ;;  %p2476_p4 = scmp.eq.s32.totalorder %s2210_s28, 0 }
  0x58   : > { %2108 = dma.done.wait (%p2476_p4), [#allocation6], 8224   ;;  %p2477_p12 = pmov %p2476_p4 }
  0x59   : > { %p2478_p13 = pmov %p2476_p4 }
  0x5a   : > { %2110 = vsyncadd (%p2477_p12), [#allocation6], 4294959072 }
  0x5b   : > { %2112 = dma.done.wait (%p2478_p13), [#allocation9], 3072   ;;  %p2479_p2 = pmov %p2476_p4 }
  0x5c   : > { %v1395_v0 = vld [vmem:[#allocation5 + $0x70] sm:$0xf]  ;;  %v1720_v1 = vld [vmem:[#allocation5 + $0x74] sm:$0xf0]  ;;  %v1387_v11 = vld [vmem:[#allocation5 + $0x60] sm:$0xf] }
  0x5d   : > { %2114 = vsyncadd (%p2479_p2), [#allocation9], 4294964224  ;;  %v1459_v2 = vld [vmem:[#allocation5 + $0xf0] sm:$0xf]  ;;  %v1396_v3 = vor.u32 %v1720_v1, %v1395_v0  ;;  %v1736_v4 = vld [vmem:[#allocation5 + $0xf4] sm:$0xf0] }
  0x5e   : > { %v1523_v5 = vld [vmem:[#allocation5 + $0x170] sm:$0xf]  ;;  %v1752_v6 = vld [vmem:[#allocation5 + $0x174] sm:$0xf0]  ;;  %v1460_v7 = vor.u32 %v1736_v4, %v1459_v2  ;;  %v1718_v13 = vld [vmem:[#allocation5 + $0x64] sm:$0xf0] }
  0x5f   : > { %v1524_v8 = vor.u32 %v1752_v6, %v1523_v5  ;;  %v1587_v9 = vld [vmem:[#allocation5 + $0x1f0] sm:$0xf]  ;;  %v1768_v10 = vld [vmem:[#allocation5 + $0x1f4] sm:$0xf0]  ;;  %797 = vmatpush.bf16.msra.mxu0 %v1396_v3  ;;  %v1451_v14 = vld [vmem:[#allocation5 + $0xe0] sm:$0xf]  ;;  %v1388_v16 = vor.u32 %v1718_v13, %v1387_v11 }
  0x60   : > { %v1588_v12 = vor.u32 %v1768_v10, %v1587_v9  ;;  %v1734_v15 = vld [vmem:[#allocation5 + $0xe4] sm:$0xf0]  ;;  %811 = vmatpush.bf16.msra.mxu1 %v1460_v7  ;;  %v1515_v18 = vld [vmem:[#allocation5 + $0x160] sm:$0xf]  ;;  %v1379_v23 = vld [vmem:[#allocation5 + $0x50] sm:$0xf] }
  0x61   : > { %825 = vmatpush.bf16.msra.mxu2 %v1524_v8  ;;  %v1452_v17 = vor.u32 %v1734_v15, %v1451_v14  ;;  %v1750_v19 = vld [vmem:[#allocation5 + $0x164] sm:$0xf0]  ;;  %v1579_v20 = vld [vmem:[#allocation5 + $0x1e0] sm:$0xf]  ;;  %v1716_v24 = vld [vmem:[#allocation5 + $0x54] sm:$0xf0] }
  0x62   : > { %839 = vmatpush.bf16.msra.mxu3 %v1588_v12  ;;  %v1516_v21 = vor.u32 %v1750_v19, %v1515_v18  ;;  %v1766_v22 = vld [vmem:[#allocation5 + $0x1e4] sm:$0xf0]  ;;  %v1443_v26 = vld [vmem:[#allocation5 + $0xd0] sm:$0xf]  ;;  %v1732_v27 = vld [vmem:[#allocation5 + $0xd4] sm:$0xf0]  ;;  %v1380_v29 = vor.u32 %v1716_v24, %v1379_v23 }
  0x63   : > { %v1580_v25 = vor.u32 %v1766_v22, %v1579_v20  ;;  %v1507_v28 = vld [vmem:[#allocation5 + $0x150] sm:$0xf]  ;;  %798 = vmatpush.bf16.msra.mxu0 %v1388_v16  ;;  %v1748_v30 = vld [vmem:[#allocation5 + $0x154] sm:$0xf0]  ;;  %v1444_v33 = vor.u32 %v1732_v27, %v1443_v26  ;;  %v1371_v35 = vld [vmem:[#allocation5 + $0x40] sm:$0xf] }
  0x64   : > { %v1571_v31 = vld [vmem:[#allocation5 + $0x1d0] sm:$0xf]  ;;  %v1764_v32 = vld [vmem:[#allocation5 + $0x1d4] sm:$0xf0]  ;;  %812 = vmatpush.bf16.msra.mxu1 %v1452_v17  ;;  %v1508_v34 = vor.u32 %v1748_v30, %v1507_v28  ;;  %v1714_v36 = vld [vmem:[#allocation5 + $0x44] sm:$0xf0] }
  0x65   : > { %826 = vmatpush.bf16.msra.mxu2 %v1516_v21  ;;  %v1435_v37 = vld [vmem:[#allocation5 + $0xc0] sm:$0xf]  ;;  %v1572_v38 = vor.u32 %v1764_v32, %v1571_v31  ;;  %v1730_v39 = vld [vmem:[#allocation5 + $0xc4] sm:$0xf0]  ;;  %v1372_v44 = vor.u32 %v1714_v36, %v1371_v35  ;;  %v1363_v47 = vld [vmem:[#allocation5 + $0x30] sm:$0xf] }
  0x66   : > { %840 = vmatpush.bf16.msra.mxu3 %v1580_v25  ;;  %v1499_v40 = vld [vmem:[#allocation5 + $0x140] sm:$0xf]  ;;  %v1746_v41 = vld [vmem:[#allocation5 + $0x144] sm:$0xf0]  ;;  %v1436_v45 = vor.u32 %v1730_v39, %v1435_v37  ;;  %v1712_v48 = vld [vmem:[#allocation5 + $0x34] sm:$0xf0] }
  0x67   : > { %v1563_v42 = vld [vmem:[#allocation5 + $0x1c0] sm:$0xf]  ;;  %v1762_v43 = vld [vmem:[#allocation5 + $0x1c4] sm:$0xf0]  ;;  %799 = vmatpush.bf16.msra.mxu0 %v1380_v29  ;;  %v1500_v46 = vor.u32 %v1746_v41, %v1499_v40  ;;  %v1427_v49 = vld [vmem:[#allocation5 + $0xb0] sm:$0xf]  ;;  %v1364_v56 = vor.u32 %v1712_v48, %v1363_v47 }
  0x68   : > { %813 = vmatpush.bf16.msra.mxu1 %v1444_v33  ;;  %v1564_v50 = vor.u32 %v1762_v43, %v1563_v42  ;;  %v1728_v51 = vld [vmem:[#allocation5 + $0xb4] sm:$0xf0]  ;;  %v1491_v52 = vld [vmem:[#allocation5 + $0x130] sm:$0xf]  ;;  %v1355_v59 = vld [vmem:[#allocation5 + $0x20] sm:$0xf] }
  0x69   : > { %827 = vmatpush.bf16.msra.mxu2 %v1508_v34  ;;  %v1744_v53 = vld [vmem:[#allocation5 + $0x134] sm:$0xf0]  ;;  %v1555_v54 = vld [vmem:[#allocation5 + $0x1b0] sm:$0xf]  ;;  %v1428_v57 = vor.u32 %v1728_v51, %v1427_v49  ;;  %v1710_v60 = vld [vmem:[#allocation5 + $0x24] sm:$0xf0] }
  0x6a   : > { %841 = vmatpush.bf16.msra.mxu3 %v1572_v38  ;;  %v1760_v55 = vld [vmem:[#allocation5 + $0x1b4] sm:$0xf0]  ;;  %v1492_v58 = vor.u32 %v1744_v53, %v1491_v52  ;;  %v1419_v61 = vld [vmem:[#allocation5 + $0xa0] sm:$0xf]  ;;  %v1726_v63 = vld [vmem:[#allocation5 + $0xa4] sm:$0xf0]  ;;  %v1356_v4 = vor.u32 %v1710_v60, %v1355_v59 }
  0x6b   : > { %800 = vmatpush.bf16.msra.mxu0 %v1372_v44  ;;  %v1556_v62 = vor.u32 %v1760_v55, %v1555_v54  ;;  %v1483_v0 = vld [vmem:[#allocation5 + $0x120] sm:$0xf]  ;;  %v1742_v1 = vld [vmem:[#allocation5 + $0x124] sm:$0xf0]  ;;  %v1347_v5 = vld [vmem:[#allocation5 + $0x10] sm:$0xf]  ;;  %v1420_v6 = vor.u32 %v1726_v63, %v1419_v61 }
  0x6c   : > { %814 = vmatpush.bf16.msra.mxu1 %v1436_v45  ;;  %v1547_v2 = vld [vmem:[#allocation5 + $0x1a0] sm:$0xf]  ;;  %v1758_v3 = vld [vmem:[#allocation5 + $0x1a4] sm:$0xf0]  ;;  %v1484_v7 = vor.u32 %v1742_v1, %v1483_v0  ;;  %v1708_v8 = vld [vmem:[#allocation5 + $0x14] sm:$0xf0] }
  0x6d   : > { %828 = vmatpush.bf16.msra.mxu2 %v1500_v46  ;;  %v1411_v9 = vld [vmem:[#allocation5 + $0x90] sm:$0xf]  ;;  %v1724_v10 = vld [vmem:[#allocation5 + $0x94] sm:$0xf0]  ;;  %v1548_v11 = vor.u32 %v1758_v3, %v1547_v2  ;;  %v1339_v16 = vld [vmem:[#allocation5] sm:$0xf]  ;;  %v1348_v18 = vor.u32 %v1708_v8, %v1347_v5 }
  0x6e   : > { %842 = vmatpush.bf16.msra.mxu3 %v1564_v50  ;;  %v1475_v12 = vld [vmem:[#allocation5 + $0x110] sm:$0xf]  ;;  %v1740_v13 = vld [vmem:[#allocation5 + $0x114] sm:$0xf0]  ;;  %v1706_v17 = vld [vmem:[#allocation5 + $0x4] sm:$0xf0]  ;;  %v1412_v23 = vor.u32 %v1724_v10, %v1411_v9 }
  0x6f   : > { %801 = vmatpush.bf16.msra.mxu0 %v1364_v56  ;;  %v1539_v14 = vld [vmem:[#allocation5 + $0x190] sm:$0xf]  ;;  %v1756_v15 = vld [vmem:[#allocation5 + $0x194] sm:$0xf0]  ;;  %v1403_v19 = vld [vmem:[#allocation5 + $0x80] sm:$0xf]  ;;  %v1476_v24 = vor.u32 %v1740_v13, %v1475_v12  ;;  %v1340_v35 = vor.u32 %v1706_v17, %v1339_v16 }
  0x70   : > { %815 = vmatpush.bf16.msra.mxu1 %v1428_v57  ;;  %v1722_v20 = vld [vmem:[#allocation5 + $0x84] sm:$0xf0]  ;;  %v1467_v21 = vld [vmem:[#allocation5 + $0x100] sm:$0xf]  ;;  %v1719_v27 = vld [vmem:[#allocation5 + $0x74] sm:$0xf]  ;;  %v1540_v28 = vor.u32 %v1756_v15, %v1539_v14 }
  0x71   : > { %829 = vmatpush.bf16.msra.mxu2 %v1492_v58  ;;  %v1738_v22 = vld [vmem:[#allocation5 + $0x104] sm:$0xf0]  ;;  %v1531_v25 = vld [vmem:[#allocation5 + $0x180] sm:$0xf]  ;;  %v1397_v29 = vld [vmem:[#allocation5 + $0x78] sm:$0xf0]  ;;  %v1404_v39 = vor.u32 %v1722_v20, %v1403_v19 }
  0x72   : > { %843 = vmatpush.bf16.msra.mxu3 %v1556_v62  ;;  %v1754_v26 = vld [vmem:[#allocation5 + $0x184] sm:$0xf0]  ;;  %v1735_v30 = vld [vmem:[#allocation5 + $0xf4] sm:$0xf]  ;;  %v1461_v31 = vld [vmem:[#allocation5 + $0xf8] sm:$0xf0]  ;;  %v1468_v40 = vor.u32 %v1738_v22, %v1467_v21  ;;  %v1400_v45 = vor.u32 %v1719_v27, %v1397_v29 }
  0x73   : > { %802 = vmatpush.bf16.msra.mxu0 %v1356_v4  ;;  %v1751_v32 = vld [vmem:[#allocation5 + $0x174] sm:$0xf]  ;;  %v1525_v33 = vld [vmem:[#allocation5 + $0x178] sm:$0xf0]  ;;  %v1331_v37 = vld [vmem:[%s2338_s24 + $0x8] sm:$0xf]  ;;  %v1532_v44 = vor.u32 %v1754_v26, %v1531_v25  ;;  %v1464_v49 = vor.u32 %v1735_v30, %v1461_v31 }
  0x74   : > { %816 = vmatpush.bf16.msra.mxu1 %v1420_v6  ;;  %v1767_v34 = vld [vmem:[#allocation5 + $0x1f4] sm:$0xf]  ;;  %v1589_v36 = vld [vmem:[#allocation5 + $0x1f8] sm:$0xf0]  ;;  %v1704_v38 = vld [vmem:[%s2338_s24 + $0x14] sm:$0xf0]  ;;  %v1528_v50 = vor.u32 %v1751_v32, %v1525_v33 }
  0x75   : > { %830 = vmatpush.bf16.msra.mxu2 %v1484_v7  ;;  %v1323_v41 = vld [vmem:[%s2338_s24] sm:$0xf]  ;;  %v1703_v42 = vld [vmem:[%s2338_s24 + $0xc] sm:$0xf0]  ;;  %v1702_v43 = vld [vmem:[%s2338_s24 + $0xc] sm:$0xf]  ;;  %v1592_v54 = vor.u32 %v1767_v34, %v1589_v36  ;;  %v2360_v55 = vor.u32 %v1704_v38, %v1331_v37 }
  0x76   : > { %844 = vmatpush.bf16.msra.mxu3 %v1548_v11  ;;  %v1333_v46 = vld [vmem:[%s2338_s24 + $0x18] sm:$0xf0]  ;;  %v1717_v47 = vld [vmem:[#allocation5 + $0x64] sm:$0xf]  ;;  %v1389_v48 = vld [vmem:[#allocation5 + $0x68] sm:$0xf0]  ;;  %v2362_v59 = vor.u32 %v1703_v42, %v1323_v41 }
  0x77   : > { %803 = vmatpush.bf16.msra.mxu0 %v1348_v18  ;;  %v1733_v51 = vld [vmem:[#allocation5 + $0xe4] sm:$0xf]  ;;  %v1325_v53 = vld [vmem:[%s2338_s24 + $0x10] sm:$0xf0]  ;;  %v1453_v56 = vld [vmem:[#allocation5 + $0xe8] sm:$0xf0]  ;;  %v2364_v60 = vor.u32 %v1702_v43, %v1333_v46  ;;  %v1392_v63 = vor.u32 %v1717_v47, %v1389_v48 }
  0x78   : > { %817 = vmatpush.bf16.msra.mxu1 %v1412_v23  ;;  %v1701_v52 = vld [vmem:[%s2338_s24 + $0x4] sm:$0xf]  ;;  %v1517_v58 = vld [vmem:[#allocation5 + $0x168] sm:$0xf0]  ;;  %v1456_v1 = vor.u32 %v1733_v51, %v1453_v56  ;;  %v1715_v3 = vld [vmem:[#allocation5 + $0x54] sm:$0xf] }
  0x79   : > { %831 = vmatpush.bf16.msra.mxu2 %v1476_v24  ;;  %v1749_v57 = vld [vmem:[#allocation5 + $0x164] sm:$0xf]  ;;  %v1581_v62 = vld [vmem:[#allocation5 + $0x1e8] sm:$0xf0]  ;;  %v2366_v0 = vor.u32 %v1701_v52, %v1325_v53  ;;  %v1381_v4 = vld [vmem:[#allocation5 + $0x58] sm:$0xf0] }
  0x7a   : > { %845 = vmatpush.bf16.msra.mxu3 %v1540_v28  ;;  %v1765_v61 = vld [vmem:[#allocation5 + $0x1e4] sm:$0xf]  ;;  %v1520_v2 = vor.u32 %v1749_v57, %v1517_v58  ;;  %v1731_v5 = vld [vmem:[#allocation5 + $0xd4] sm:$0xf]  ;;  %v1445_v7 = vld [vmem:[#allocation5 + $0xd8] sm:$0xf0]  ;;  %v1384_v12 = vor.u32 %v1715_v3, %v1381_v4 }
  0x7b   : > { %804 = vmatpush.bf16.msra.mxu0 %v1340_v35  ;;  %v1584_v6 = vor.u32 %v1765_v61, %v1581_v62  ;;  %v1747_v8 = vld [vmem:[#allocation5 + $0x154] sm:$0xf]  ;;  %v1509_v9 = vld [vmem:[#allocation5 + $0x158] sm:$0xf0]  ;;  %v1448_v13 = vor.u32 %v1731_v5, %v1445_v7  ;;  %v1713_v15 = vld [vmem:[#allocation5 + $0x44] sm:$0xf] }
  0x7c   : > { %818 = vmatpush.bf16.msra.mxu1 %v1404_v39  ;;  %v1763_v10 = vld [vmem:[#allocation5 + $0x1d4] sm:$0xf]  ;;  %v1573_v11 = vld [vmem:[#allocation5 + $0x1d8] sm:$0xf0]  ;;  %v1512_v14 = vor.u32 %v1747_v8, %v1509_v9  ;;  %v1373_v16 = vld [vmem:[#allocation5 + $0x48] sm:$0xf0] }
  0x7d   : > { %832 = vmatpush.bf16.msra.mxu2 %v1468_v40  ;;  %v1729_v17 = vld [vmem:[#allocation5 + $0xc4] sm:$0xf]  ;;  %v1576_v18 = vor.u32 %v1763_v10, %v1573_v11  ;;  %v1437_v19 = vld [vmem:[#allocation5 + $0xc8] sm:$0xf0]  ;;  %v1376_v24 = vor.u32 %v1713_v15, %v1373_v16  ;;  %v1711_v27 = vld [vmem:[#allocation5 + $0x34] sm:$0xf] }
  0x7e   : > { %846 = vmatpush.bf16.msra.mxu3 %v1532_v44  ;;  %805 = vmatmul.bf16.vlgmr.msra.gmra.mxu0 %v2362_v59  ;;  %v1745_v20 = vld [vmem:[#allocation5 + $0x144] sm:$0xf]  ;;  %v1501_v21 = vld [vmem:[#allocation5 + $0x148] sm:$0xf0]  ;;  %v1440_v25 = vor.u32 %v1729_v17, %v1437_v19  ;;  %v1365_v28 = vld [vmem:[#allocation5 + $0x38] sm:$0xf0] }
  0x7f   : > { %853 = vmatpush.bf16.msrb.mxu0 %v1400_v45  ;;  %819 = vmatmul.bf16.vlgmr.msra.gmra.mxu1 %v2366_v0  ;;  %v1761_v22 = vld [vmem:[#allocation5 + $0x1c4] sm:$0xf]  ;;  %v1565_v23 = vld [vmem:[#allocation5 + $0x1c8] sm:$0xf0]  ;;  %v1504_v26 = vor.u32 %v1745_v20, %v1501_v21  ;;  %v1727_v29 = vld [vmem:[#allocation5 + $0xb4] sm:$0xf]  ;;  %v1368_v36 = vor.u32 %v1711_v27, %v1365_v28 }
  0x80   : > { %867 = vmatpush.bf16.msrb.mxu1 %v1464_v49  ;;  %833 = vmatmul.bf16.vlgmr.msra.gmra.mxu2 %v2360_v55  ;;  %v1568_v30 = vor.u32 %v1761_v22, %v1565_v23  ;;  %v1429_v31 = vld [vmem:[#allocation5 + $0xb8] sm:$0xf0]  ;;  %v1743_v32 = vld [vmem:[#allocation5 + $0x134] sm:$0xf]  ;;  %v1709_v37 = vld [vmem:[#allocation5 + $0x24] sm:$0xf] }
  0x81   : > { %881 = vmatpush.bf16.msrb.mxu2 %v1528_v50  ;;  %847 = vmatmul.bf16.vlgmr.msra.gmra.mxu3 %v2364_v60  ;;  %v1493_v33 = vld [vmem:[#allocation5 + $0x138] sm:$0xf0]  ;;  %v1759_v34 = vld [vmem:[#allocation5 + $0x1b4] sm:$0xf]  ;;  %v1357_v38 = vld [vmem:[#allocation5 + $0x28] sm:$0xf0]  ;;  %v1432_v39 = vor.u32 %v1727_v29, %v1429_v31 }
  0x82   : > { %895 = vmatpush.bf16.msrb.mxu3 %v1592_v54  ;;  %v1557_v35 = vld [vmem:[#allocation5 + $0x1b8] sm:$0xf0]  ;;  %v1496_v40 = vor.u32 %v1743_v32, %v1493_v33  ;;  %v1725_v41 = vld [vmem:[#allocation5 + $0xa4] sm:$0xf]  ;;  %v1421_v42 = vld [vmem:[#allocation5 + $0xa8] sm:$0xf0]  ;;  %v1360_v48 = vor.u32 %v1709_v37, %v1357_v38 }
  0x83   : > { %854 = vmatpush.bf16.msrb.mxu0 %v1392_v63  ;;  %v1560_v43 = vor.u32 %v1759_v34, %v1557_v35  ;;  %v1741_v44 = vld [vmem:[#allocation5 + $0x124] sm:$0xf]  ;;  %v1485_v45 = vld [vmem:[#allocation5 + $0x128] sm:$0xf0]  ;;  %v1424_v49 = vor.u32 %v1725_v41, %v1421_v42  ;;  %v1707_v51 = vld [vmem:[#allocation5 + $0x14] sm:$0xf] }
  0x84   : > { %868 = vmatpush.bf16.msrb.mxu1 %v1456_v1  ;;  %v1757_v46 = vld [vmem:[#allocation5 + $0x1a4] sm:$0xf]  ;;  %v1549_v47 = vld [vmem:[#allocation5 + $0x1a8] sm:$0xf0]  ;;  %v1488_v50 = vor.u32 %v1741_v44, %v1485_v45  ;;  %v1349_v52 = vld [vmem:[#allocation5 + $0x18] sm:$0xf0] }
  0x85   : > { %882 = vmatpush.bf16.msrb.mxu2 %v1520_v2  ;;  %v1723_v53 = vld [vmem:[#allocation5 + $0x94] sm:$0xf]  ;;  %v1552_v54 = vor.u32 %v1757_v46, %v1549_v47  ;;  %v1413_v56 = vld [vmem:[#allocation5 + $0x98] sm:$0xf0]  ;;  %v1352_v63 = vor.u32 %v1707_v51, %v1349_v52  ;;  %v1705_v3 = vld [vmem:[#allocation5 + $0x4] sm:$0xf] }
  0x86   : > { %896 = vmatpush.bf16.msrb.mxu3 %v1584_v6  ;;  %v1739_v57 = vld [vmem:[#allocation5 + $0x114] sm:$0xf]  ;;  %v1477_v58 = vld [vmem:[#allocation5 + $0x118] sm:$0xf0]  ;;  %v1416_v1 = vor.u32 %v1723_v53, %v1413_v56  ;;  %v1341_v4 = vld [vmem:[#allocation5 + $0x8] sm:$0xf0] }
  0x87   : > { %855 = vmatpush.bf16.msrb.mxu0 %v1384_v12  ;;  %v1755_v61 = vld [vmem:[#allocation5 + $0x194] sm:$0xf]  ;;  %v1541_v62 = vld [vmem:[#allocation5 + $0x198] sm:$0xf0]  ;;  %v1480_v2 = vor.u32 %v1739_v57, %v1477_v58  ;;  %v1721_v5 = vld [vmem:[#allocation5 + $0x84] sm:$0xf]  ;;  %v1344_v12 = vor.u32 %v1705_v3, %v1341_v4 }
  0x88   : > { %869 = vmatpush.bf16.msrb.mxu1 %v1448_v13  ;;  %v1544_v6 = vor.u32 %v1755_v61, %v1541_v62  ;;  %v1405_v7 = vld [vmem:[#allocation5 + $0x88] sm:$0xf0]  ;;  %v1737_v8 = vld [vmem:[#allocation5 + $0x104] sm:$0xf]  ;;  %v1776_v16 = vld [vmem:[#allocation8 + $0x38] sm:$0xff]  ;;  %s1320_s11 = sshll.u32 %s2334_s20, 3 }
  0x89   : > { %883 = vmatpush.bf16.msrb.mxu2 %v1512_v14  ;;  %v1469_v9 = vld [vmem:[#allocation5 + $0x108] sm:$0xf0]  ;;  %v1753_v10 = vld [vmem:[#allocation5 + $0x184] sm:$0xf]  ;;  %v1408_v13 = vor.u32 %v1721_v5, %v1405_v7  ;;  %v1775_v17 = vld [vmem:[#allocation8 + $0x30] sm:$0xff]  ;;  %s371_s19 = scalar_lea.vmem [#allocation11], %s1320_s11 }
  0x8a   : > { %897 = vmatpush.bf16.msrb.mxu3 %v1576_v18  ;;  %v1533_v11 = vld [vmem:[#allocation5 + $0x188] sm:$0xf0]  ;;  %v1472_v14 = vor.u32 %v1737_v8, %v1469_v9  ;;  %v1773_v19 = vld [vmem:[#allocation8 + $0x20] sm:$0xff]  ;;  %v1772_v20 = vld [vmem:[#allocation8 + $0x18] sm:$0xff]  ;;  %s1165_s22 = scalar_lea.sflag [#allocation4], %s2334_s20  ;;  %s1690_s23 = sshll.u32 (%p2241_p11), %s2210_s28, 1 }
  0x8b   : > { %856 = vmatpush.bf16.msrb.mxu0 %v1376_v24  ;;  %v1536_v15 = vor.u32 %v1753_v10, %v1533_v11  ;;  %v1774_v18 = vld [vmem:[#allocation8 + $0x28] sm:$0xff]  ;;  %v1771_v21 = vld [vmem:[#allocation8 + $0x10] sm:$0xff]  ;;  %v1769_v23 = vld [vmem:[#allocation8] sm:$0xff]  ;;  %s1173_s21 = ssub.s32 (%p2241_p11), 3, %s1690_s23 }
  0x8c   : > { %870 = vmatpush.bf16.msrb.mxu1 %v1440_v25  ;;  %v1770_v22 = vld [vmem:[#allocation8 + $0x8] sm:$0xff]  ;;  %v1784_v24 = vld [vmem:[#allocation8 + $0x78] sm:$0xff]  ;;  %v1781_v25 = vld [vmem:[#allocation8 + $0x60] sm:$0xff]  ;;  %p1174_p6 = scmp.lt.s32.totalorder (%p2241_p11), %s1173_s21, 2 }
  0x8d   : > { %884 = vmatpush.bf16.msrb.mxu2 %v1504_v26  ;;  %v1779_v35 = vld [vmem:[#allocation8 + $0x50] sm:$0xff]  ;;  %v1777_v46 = vld [vmem:[#allocation8 + $0x40] sm:$0xff]  ;;  %v1792_v9 = vld [vmem:[#allocation10 + $0x38] sm:$0xff] }
  0x8e   : > { %898 = vmatpush.bf16.msrb.mxu3 %v1568_v30  ;;  %v1780_v30 = vld [vmem:[#allocation8 + $0x58] sm:$0xff]  ;;  %v1791_v10 = vld [vmem:[#allocation10 + $0x30] sm:$0xff]  ;;  %v1790_v11 = vld [vmem:[#allocation10 + $0x28] sm:$0xff] }
  0x8f   : > { %857 = vmatpush.bf16.msrb.mxu0 %v1368_v36 }
  0x90   : > { %871 = vmatpush.bf16.msrb.mxu1 %v1432_v39 }
  0x91   : > { %885 = vmatpush.bf16.msrb.mxu2 %v1496_v40  ;;  %v1778_v40 = vld [vmem:[#allocation8 + $0x48] sm:$0xff] }
  0x92   : > { %899 = vmatpush.bf16.msrb.mxu3 %v1560_v43 }
  0x93   : > { %858 = vmatpush.bf16.msrb.mxu0 %v1360_v48 }
  0x94   : > { %872 = vmatpush.bf16.msrb.mxu1 %v1424_v49 }
  0x95   : > { %886 = vmatpush.bf16.msrb.mxu2 %v1488_v50 }
  0x96   : > { %900 = vmatpush.bf16.msrb.mxu3 %v1552_v54 }
  0x97   : > { %859 = vmatpush.bf16.msrb.mxu0 %v1352_v63 }
  0x98   : > { %873 = vmatpush.bf16.msrb.mxu1 %v1416_v1 }
  0x99   : > { %887 = vmatpush.bf16.msrb.mxu2 %v1480_v2 }
  0x9a   : > { %901 = vmatpush.bf16.msrb.mxu3 %v1544_v6 }
  0x9b   : > { %860 = vmatpush.bf16.msrb.mxu0 %v1344_v12  ;;  %v1789_v12 = vld [vmem:[#allocation10 + $0x20] sm:$0xff] }
  0x9c   : > { %874 = vmatpush.bf16.msrb.mxu1 %v1408_v13  ;;  %v1788_v13 = vld [vmem:[#allocation10 + $0x18] sm:$0xff] }
  0x9d   : > { %888 = vmatpush.bf16.msrb.mxu2 %v1472_v14  ;;  %v1787_v14 = vld [vmem:[#allocation10 + $0x10] sm:$0xff] }
  0x9e   : > { %902 = vmatpush.bf16.msrb.mxu3 %v1536_v15  ;;  %861 = vmatmul.bf16.vlgmr.msrb.gmra.mxu0 %v2362_v59  ;;  %v1783_v59 = vld [vmem:[#allocation8 + $0x70] sm:$0xff]  ;;  %v1786_v15 = vld [vmem:[#allocation10 + $0x8] sm:$0xff] }
  0x9f   : > { %1047 = vmatpush.bf16.msra.mxu0 %v1776_v16  ;;  %875 = vmatmul.bf16.vlgmr.msrb.gmra.mxu1 %v2366_v0  ;;  %v451_v0 = vld [vmem:[#allocation7] sm:$0x3]  ;;  %v1785_v16 = vld [vmem:[#allocation10] sm:$0xff] }
  0xa0   : > { %889 = vmatmul.bf16.vlgmr.msrb.gmra.mxu2 %v2360_v55  ;;  %1061 = vmatpush.bf16.msra.mxu1 %v1784_v24  ;;  %v1782_v55 = vld [vmem:[#allocation8 + $0x68] sm:$0xff]  ;;  %v454_v49 = vperm.slane %v451_v0, 1 }
  0xa1   : > { %903 = vmatmul.bf16.vlgmr.msrb.gmra.mxu3 %v2364_v60  ;;  %v453_v60 = vperm.slane %v451_v0, 0  ;;  %1146 = vmatpush.bf16.msra.mxu2 %v1792_v9 }
  0xa3   : > { %1048 = vmatpush.bf16.msra.mxu0 %v1775_v17 }
  0xa4   : > { %1062 = vmatpush.bf16.msra.mxu1 %v1783_v59 }
  0xa5   : > { %1147 = vmatpush.bf16.msra.mxu2 %v1791_v10 }
  0xa7   : > { %1049 = vmatpush.bf16.msra.mxu0 %v1774_v18 }
  0xa8   : > { %1063 = vmatpush.bf16.msra.mxu1 %v1782_v55 }
  0xa9   : > { %1148 = vmatpush.bf16.msra.mxu2 %v1790_v11 }
  0xab   : > { %1050 = vmatpush.bf16.msra.mxu0 %v1773_v19  ;;  %v1887_v19 = vld [vmem:[%s2449_s4] ss:$0 sm:$0xff] }
  0xac   : > { %1064 = vmatpush.bf16.msra.mxu1 %v1781_v25 }
  0xad   : > { %1149 = vmatpush.bf16.msra.mxu2 %v1789_v12 }
  0xaf   : > { %1051 = vmatpush.bf16.msra.mxu0 %v1772_v20 }
  0xb0   : > { %1065 = vmatpush.bf16.msra.mxu1 %v1780_v30 }
  0xb1   : > { %1150 = vmatpush.bf16.msra.mxu2 %v1788_v13 }
  0xb3   : > { %1052 = vmatpush.bf16.msra.mxu0 %v1771_v21 }
  0xb4   : > { %1066 = vmatpush.bf16.msra.mxu1 %v1779_v35 }
  0xb5   : > { %1151 = vmatpush.bf16.msra.mxu2 %v1787_v14 }
  0xb7   : > { %1053 = vmatpush.bf16.msra.mxu0 %v1770_v22 }
  0xb8   : > { %1067 = vmatpush.bf16.msra.mxu1 %v1778_v40 }
  0xb9   : > { %1152 = vmatpush.bf16.msra.mxu2 %v1786_v15 }
  0xbb   : > { %1054 = vmatpush.bf16.msra.mxu0 %v1769_v23 }
  0xbc   : > { %1068 = vmatpush.bf16.msra.mxu1 %v1777_v46 }
  0xbd   : > { %1153 = vmatpush.bf16.msra.mxu2 %v1785_v16 }
  0xfb   : > { %v806_v26 = vpop.f32.mrf.mxu0 }
  0xfc   : > { %v807_v27 = vadd.f32 %v806_v26, %v453_v60  ;;  %v820_v28 = vpop.f32.mrf.mxu1  ;;  %v1888_v26 = vld [vmem:[%s2451_s6] ss:$0 sm:$0xff] }
  0xfe   : > { %v821_v29 = vadd.f32 %v820_v28, %v807_v27 }
 0x103   : > { %v834_v31 = vpop.f32.mrf.mxu2  ;;  %v808_v34 = vpop.f32.mrf.mxu0 }
 0x104   : > { %v848_v32 = vpop.f32.mrf.mxu3  ;;  %v835_v33 = vadd.f32 %v834_v31, %v821_v29  ;;  %v809_v36 = vadd.f32 %v808_v34, %v453_v60  ;;  %v822_v37 = vpop.f32.mrf.mxu1 }
 0x106   : > { %v823_v38 = vadd.f32 %v822_v37, %v809_v36  ;;  %v849_v39 = vadd.f32 %v848_v32, %v835_v33 }
 0x108   : > { %v909_v44 = vmax.f32 %v849_v39, 0.0 }
 0x10b   : > { %v836_v41 = vpop.f32.mrf.mxu2 }
 0x10c   : > { %v837_v42 = vadd.f32 %v836_v41, %v823_v38  ;;  %v850_v43 = vpop.f32.mrf.mxu3 }
 0x10e   : > { %v851_v45 = vadd.f32 %v850_v43, %v837_v42 }
 0x110   : > { %v911_v47 = vmax.f32 %v851_v45, 0.0 }
 0x112   : > { %v913_v48 = vpack.c.bf16 %v911_v47, %v909_v44 }
 0x114   : > { %1055 = vmatmul.bf16.vlgmr.msra.gmra.mxu0 %v913_v48 }
 0x11b   : > { %v862_v50 = vpop.f32.mrf.mxu0 }
 0x11c   : > { %v876_v51 = vpop.f32.mrf.mxu1  ;;  %v863_v52 = vadd.f32 %v862_v50, %v454_v49 }
 0x11e   : > { %v877_v54 = vadd.f32 %v876_v51, %v863_v52 }
 0x123   : > { %v890_v53 = vpop.f32.mrf.mxu2  ;;  %v864_v57 = vpop.f32.mrf.mxu0 }
 0x124   : > { %v904_v56 = vpop.f32.mrf.mxu3  ;;  %v865_v58 = vadd.f32 %v864_v57, %v454_v49  ;;  %v891_v61 = vadd.f32 %v890_v53, %v877_v54  ;;  %v878_v62 = vpop.f32.mrf.mxu1 }
 0x126   : > { %v879_v63 = vadd.f32 %v878_v62, %v865_v58  ;;  %v905_v2 = vadd.f32 %v904_v56, %v891_v61 }
 0x128   : > { %v910_v6 = vmax.f32 %v905_v2, 0.0 }
 0x12b   : > { %v892_v1 = vpop.f32.mrf.mxu2 }
 0x12c   : > { %v893_v3 = vadd.f32 %v892_v1, %v879_v63  ;;  %v906_v4 = vpop.f32.mrf.mxu3 }
 0x12e   : > { %v907_v5 = vadd.f32 %v906_v4, %v893_v3 }
 0x130   : > { %v912_v7 = vmax.f32 %v907_v5, 0.0 }
 0x132   : > { %v914_v8 = vpack.c.bf16 %v912_v7, %v910_v6 }
 0x134   : > { %1069 = vmatmul.bf16.vlgmr.msra.gmra.mxu1 %v914_v8 }
 0x191   : > { %v1056_v17 = vpop.f32.mrf.mxu0 }
 0x192   : > { %v1057_v21 = vadd.f32 %v1887_v19, %v1056_v17 }
 0x199   : > { %v1058_v20 = vpop.f32.mrf.mxu0 }
 0x19a   : > { %v1059_v22 = vadd.f32 %v1887_v19, %v1058_v20 }
 0x1b1   : > { %v1070_v18 = vpop.f32.mrf.mxu1 }
 0x1b2   : > { %v1071_v23 = vadd.f32 %v1070_v18, %v1057_v21 }
 0x1b4   : > { %v1075_v0 = vmax.f32 %v1071_v23, 0.0 }
 0x1b9   : > { %v1072_v24 = vpop.f32.mrf.mxu1 }
 0x1ba   : > { %v1073_v59 = vadd.f32 %v1072_v24, %v1059_v22 }
 0x1bc   : > { %v1076_v55 = vmax.f32 %v1073_v59, 0.0 }
 0x1be   : > { %v1077_v60 = vpack.c.bf16 %v1076_v55, %v1075_v0 }
 0x1c0   : > { %1154 = vmatmul.bf16.vlgmr.msra.gmra.mxu2 %v1077_v60 }
 0x243   : > { %v1155_v25 = vpop.f32.mrf.mxu2 }
 0x244   : > { %v1156_v28 = vadd.f32 %v1888_v26, %v1155_v25 }
 0x24b   : > { %v1157_v27 = vpop.f32.mrf.mxu2 }
 0x24c   : > { %v1158_v29 = vadd.f32 %v1888_v26, %v1157_v27  ;;  %1171 = sbr.rel (!%p2241_p11) target bundleno = 624 (0x270), region = 72 }
 0x24e   : > { %v1797_v30 = vpack.c.bf16 %v1158_v29, %v1156_v28 }
 0x250   : > { %1798 = vst [vmem:[%s371_s19] sm:$0xff] %v1797_v30  }
 0x251   : > { %s2494_s21 = smov (!%p1174_p6, %s1173_s21), 2 }
 0x252   : > { %s1691_s7 = sshll.u32 %s2494_s21, 2 }
 0x253   : > { %s1177_s30 = ssub.s32 8, %s1691_s7 }
 0x254   : > { %s1178_s29 = sshll.u32 %s1177_s30, 4 }
 0x255   : > { %1179 = vsyncadd %s1165_s22, %s1178_s29  ;;  %p2392_p5 = scmp.ne.s32.totalorder %s1691_s7, 0  ;;  %s1793_s13 = sshll.u32 %s2210_s28, 3 }
 0x256   : > { %s2481_s17 = sld [smem:[#allocation22_spill]]  ;;  %s1184_s1 = sshll.u32 %s371_s19, 4  ;;  %s2400_s1 = int_to_ptr.vmem [resolvable:$true] %s1184_s1 }
 0x257   : > { %s1695_s24 = sshll.u32 %s2494_s21, 6  ;;  %s2048_s12 = sshra.s32 %s2400_s1, 4  ;;  %s2049_s12 = int_to_ptr.vmem [resolvable:$true] %s2048_s12 }
 0x258   : > { %s2050_s15 = sshrl.u32 %s1695_s24, 4  ;;  %s2146_s28 = smov [#allocation11]  }
 0x259   : > { %s2055_s10 = scalar_lea.vmem %s2049_s12, %s2050_s15  ;;  %s2059_s14 = scalar_lea.vmem %s2146_s28, 16 }
 0x25a   : > { %p2056_p11 = scmp.ne.s32.totalorder %s2049_s12, %s2055_s10  ;;  %p2061_p1 = scmp.lt.s32.totalorder %s2059_s14, %s2055_s10 }
 0x25c   : > { %s1182_s18 = scalar_lea.hbm %s2481_s17, %s1793_s13  ;;  %p2057_p9 = pnand %p2056_p11, %p2392_p5 }
 0x25d   : > { %s1186_s3 = sshll.u32 %s1182_s18, 4  ;;  %s2402_s3 = int_to_ptr.hbm [resolvable:$true] %s1186_s3 }
 0x25e   : > { %p2058_p10 = pneg %p2057_p9 }
 0x260   : > { %p2063_p0 = pnand %p2061_p1, %p2058_p10 }
 0x262   : > { %2066 = shalt.err (!%p2063_p0)
}
 0x263   : > { %s2067_s11 = sshra.s32 %s2402_s3, 4  ;;  %s2078_s30 = scalar_lea.hbm %s2481_s17, 12  ;;  %s2068_s11 = int_to_ptr.hbm [resolvable:$true] %s2067_s11 }
 0x264   : > { %s2074_s19 = scalar_lea.hbm %s2068_s11, %s2050_s15  ;;  %p2079_p4 = scmp.lt.s32.totalorder %s2068_s11, %s2481_s17 }
 0x265   : > { %p2075_p3 = scmp.ne.s32.totalorder %s2068_s11, %s2074_s19  ;;  %p2080_p12 = scmp.lt.s32.totalorder %s2078_s30, %s2074_s19 }
 0x267   : > { %p2076_p7 = pnand %p2075_p3, %p2392_p5  ;;  %p2081_p13 = por %p2080_p12, %p2079_p4 }
 0x269   : > { %p2077_p8 = pneg %p2076_p7 }
 0x26b   : > { %p2082_p2 = pnand %p2081_p13, %p2077_p8 }
 0x26d   : > { %2085 = shalt.err (!%p2082_p2)
}
 0x26e   : > { %s2147_s9 = smov 64   ;;  %s2148_s16 = smov 4  }
 0x26f   : > { %1192 = dma.vmem_to_hbm [thread:$0]  (%p2392_p5), %s2400_s1, %s1695_s24, %s2402_s3, %s1165_s22, %s2147_s9, %s2147_s9, %s2148_s16  }
 0x270 PF: > { %s2482_s18 = sld [smem:[#allocation16_spill]]  ;;  %p2485_p11 = scmp.ge.s32.totalorder %s2133_s27, 2 }
 0x271   : > { %s2483_s12 = sld [smem:[#allocation19_spill]] }
 0x276   : > { %s1201_s15 = sand.u32 1, %s2482_s18  }
 0x277   : > { %p2484_p6 = scmp.ne.s32.totalorder %s2483_s12, 0  ;;  %s1202_s10 = scalar_lea.sflag [#allocation4], %s1201_s15 }
 0x279   : > { %p1831_p9 = pnand %p2485_p11, %p2484_p6 }
 0x27b   : > { %p1832_p10 = pneg %p1831_p9 }
 0x27d   : > { %2116 = dma.done.wait (%p1832_p10), %s1202_s10, 128  }
 0x27e   : > { %2118 = vsyncadd (%p1832_p10), %s1202_s10, 4294967168  ;;  %s2486_s27 = sld [smem:[#allocation17_spill]]  ;;  %s2488_s24 = smov %s2125_s25 }
 0x27f   : > { %s2487_s8 = sld [smem:[#allocation18_spill]]  ;;  %s2489_s25 = smov %s2129_s26 }
 0x284   : > { %p22_p1 = scmp.ge.s32.totalorder %s2486_s27, 4  }
 0x285   : > { %s2490_s26 = smov %s2487_s8 }
 0x286   :  { %24 = sbr.rel (!%p22_p1) target bundleno = 11 (0xb), region = 109 }
 0x28b   :  { %1208 = vsyncpa [#allocation3], 1 }
 0x28c   :  { %1210 = vsyncpa [#allocation3 + $0x1], 1 }
 0x28d   :  { %1211 = vsyncpa [#allocation6], 1 }
 0x28e   :  { %1212 = vsyncpa [#allocation9], 1 }
 0x28f   :  { %1213 = vsyncpa [#allocation4], 1 }
 0x290   :  { %1215 = vsyncpa [#allocation4 + $0x1], 1 }

</bundles_post_ra>
